<compile_context>
chip_gen: v5e
topology: v5e:2x2
jax: 0.10.0
libtpu: 0.0.40
codegen_flags: <defaults>
</compile_context>

<pallas_src>
import numpy as np
import jax
import jax.numpy as jnp
from jax.experimental import pallas as pl
from jax.experimental.pallas import tpu as pltpu


def _make_kernel(H, W, alpha):
    Wf = np.float32(W)
    Hf = np.float32(H)
    x_scale = np.float32(W / alpha)
    y_scale = np.float32(H / alpha)
    pi = np.float32(np.pi)

    def kernel(reg_ref, cxy_ref, half_w_ref, half_h_ref,
               rois_ref, xc_ref, yc_ref):
        # reg_ref : (2, NA_pad, hw_blk)  -- tx/ty as leading-axis planes
        # cxy_ref : (2, hw_blk)          -- cx/cy rows (sublane-broadcast)
        # half_*  : (NA_pad, 1)          -- per-(batch, anchor) scalars
        tx = reg_ref[0]                  # contiguous full-tile load
        ty = reg_ref[1]
        cx = cxy_ref[0:1, :]             # (1, hw_blk)
        cy = cxy_ref[1:2, :]

        # Hoist the (NA,1) -> (NA,hw_blk) lane-broadcasts once; reused 4x each.
        hw_b = jnp.broadcast_to(half_w_ref[...], tx.shape)
        hh_b = jnp.broadcast_to(half_h_ref[...], ty.shape)
        w_max = Wf - hw_b
        h_max = Hf - hh_b

        # center regression + per-anchor clamp
        # (torch.clamp / np.clip semantics when min > max -> max)
        xr = jnp.clip(cx + x_scale * jnp.sin(tx * pi), hw_b, w_max)
        yr = jnp.clip(cy + y_scale * jnp.sin(ty * pi), hh_b, h_max)

        xc_ref[...] = xr
        yc_ref[...] = yr

        # rois channel-major: [x1, y1, x2, y2] — full lane-dense planes.
        # (batch-index plane is generated by XLA glue; not worth kernel stores)
        rois_ref[0] = xr - hw_b
        rois_ref[1] = yr - hh_b
        rois_ref[2] = xr + hw_b
        rois_ref[3] = yr + hh_b

    return kernel


def _pick_hw_block(HW):
    # 512-1024 lane blocks are the HBM-roofline sweet spot; at small sizes
    # prefer a block that still yields >= 2 grid steps so the pipeline /
    # dual-TC path is exercised.
    for blk in (1024, 512, 256, 128):
        if HW % blk == 0 and HW // blk >= 2:
            return blk
    for blk in (1024, 512, 256, 128):
        if HW % blk == 0:
            return blk
    return HW   # full-extent block (exempt from the (8,128) rule)


def get_box_rois(regressed_result, ori_feature_shape, center_point,
                 anchors_size, alpha, block_size=None, rois_layout="torch"):
    # block_size is stored but unused by the PyTorch forward; kept for fidelity.
    N, C, H, W = ori_feature_shape
    Nr, n2, H_, W_ = regressed_result.shape
    assert Nr == N
    A = n2 // 2
    NA = N * A
    NA_pad = ((NA + 7) // 8) * 8          # full 8-sublane tiles, no masked stores
    HW = H_ * W_
    hw_blk = _pick_hw_block(HW)
    n_blk = HW // hw_blk

    # tx/ty channel-leading so the tiled (last-two) dims are (NA_pad, HW):
    # no 2->8 sublane padding, contiguous tx/ty loads in the kernel.
    r = jnp.asarray(regressed_result, jnp.float32).reshape(N, A, 2, HW)
    reg2 = jnp.transpose(r, (2, 0, 1, 3)).reshape(2, NA, HW)

    cx = jnp.asarray(center_point[0], jnp.float32).reshape(1, HW)
    cy = jnp.asarray(center_point[1], jnp.float32).reshape(1, HW)
    cxy = jnp.concatenate([cx, cy], axis=0)                        # (2, HW)

    anchors = np.asarray(anchors_size, np.float32)                 # (A, 2)
    half_w_np = np.tile(anchors[:, 0] * 0.5, N).reshape(NA, 1)
    half_h_np = np.tile(anchors[:, 1] * 0.5, N).reshape(NA, 1)
    if NA_pad != NA:
        pad = NA_pad - NA
        reg2 = jnp.pad(reg2, ((0, 0), (0, pad), (0, 0)))
        half_w_np = np.pad(half_w_np, ((0, pad), (0, 0)))
        half_h_np = np.pad(half_h_np, ((0, pad), (0, 0)))
    half_w = jnp.asarray(half_w_np, jnp.float32)
    half_h = jnp.asarray(half_h_np, jnp.float32)

    kernel = _make_kernel(H, W, alpha)

    rois4, xc, yc = pl.pallas_call(
        kernel,
        out_shape=(
            jax.ShapeDtypeStruct((4, NA_pad, HW), jnp.float32),
            jax.ShapeDtypeStruct((NA_pad, HW), jnp.float32),
            jax.ShapeDtypeStruct((NA_pad, HW), jnp.float32),
        ),
        grid=(n_blk,),
        in_specs=[
            pl.BlockSpec((2, NA_pad, hw_blk), lambda j: (0, 0, j)),
            pl.BlockSpec((2, hw_blk), lambda j: (0, j)),
            pl.BlockSpec((NA_pad, 1), lambda j: (0, 0)),
            pl.BlockSpec((NA_pad, 1), lambda j: (0, 0)),
        ],
        out_specs=(
            pl.BlockSpec((4, NA_pad, hw_blk), lambda j: (0, 0, j)),
            pl.BlockSpec((NA_pad, hw_blk), lambda j: (0, j)),
            pl.BlockSpec((NA_pad, hw_blk), lambda j: (0, j)),
        ),
        compiler_params=pltpu.CompilerParams(
            dimension_semantics=("parallel",)),
    )(reg2, cxy, half_w, half_h)

    # strip the NA padding
    rois4 = rois4[:, :NA, :]
    xc = xc[:NA].reshape(N, A, H_, W_)
    yc = yc[:NA].reshape(N, A, H_, W_)

    if rois_layout == "channel_major":
        # TODO(synk): preferred at production scale — consumer avoids the
        # lane-hostile (..., 5) layout and the full re-read/re-write transpose.
        return rois4.reshape(4, N, A, H_, W_), [xc, yc]

    # XLA glue reproducing the PyTorch layout (N, A, H_, W_, 5) with the
    # leading channel being the (float) batch index.
    boxes = jnp.transpose(rois4.reshape(4, N, A, H_, W_), (1, 2, 3, 4, 0))
    bidx = jax.lax.broadcasted_iota(jnp.float32, (N, A, H_, W_, 1), 0)
    rois = jnp.concatenate([bidx, boxes], axis=-1)
    return rois, [xc, yc]


def _reference_numpy(reg, ori_shape, center_point, anchors, alpha):
    N, C, H, W = ori_shape
    _, n2, H_, W_ = reg.shape
    A = n2 // 2
    r = reg.reshape(N, A, 2, H_, W_)
    tx, ty = r[:, :, 0], r[:, :, 1]
    aw = anchors[:, 0].reshape(1, A, 1, 1).astype(np.float32)
    ah = anchors[:, 1].reshape(1, A, 1, 1).astype(np.float32)
    cx, cy = center_point
    xr = cx + W / alpha * np.sin(tx * np.pi)
    yr = cy + H / alpha * np.sin(ty * np.pi)
    xr = np.clip(xr, aw / 2, W - aw / 2)
    yr = np.clip(yr, ah / 2, H - ah / 2)
    x1, y1 = xr - aw / 2, yr - ah / 2
    x2, y2 = xr + aw / 2, yr + ah / 2
    idx = np.broadcast_to(
        np.arange(N, dtype=np.float32).reshape(N, 1, 1, 1), xr.shape)
    rois = np.stack([idx, x1, y1, x2, y2], axis=-1)
    return rois, [xr, yr]


if __name__ == "__main__":
    key = jax.random.PRNGKey(0)

    # Small, module-consistent shapes.
    N, C, H, W = 2, 4, 16, 16          # ori_feature_shape
    H_, W_ = 16, 16                    # regressed feature spatial size
    anchors_size = [[4.0, 6.0], [8.0, 8.0], [12.0, 10.0]]   # A = 3
    A = len(anchors_size)
    alpha = 8.0
    block_size = 2                     # unused by forward

    k1, _ = jax.random.split(key)
    regressed_result = jax.random.normal(k1, (N, 2 * A, H_, W_), jnp.float32)

    # center_point: per-pixel center coordinate grids (x, y)
    ys, xs = np.meshgrid(np.arange(H_, dtype=np.float32),
                         np.arange(W_, dtype=np.float32), indexing="ij")
    center_point = (xs + 0.5, ys + 0.5)

    rois, (xc, yc) = get_box_rois(regressed_result, (N, C, H, W),
                                  center_point, anchors_size, alpha,
                                  block_size=block_size)
    jax.block_until_ready((rois, xc, yc))

    # correctness check against a pure-numpy reference of the PyTorch forward
    # (TPU jnp.sin is a VPU polynomial approx; 1e-4 tolerance is ample here)
    ref_rois, (ref_xc, ref_yc) = _reference_numpy(
        np.asarray(regressed_result), (N, C, H, W), center_point,
        np.asarray(anchors_size, np.float32), alpha)

    np.testing.assert_allclose(np.asarray(rois), ref_rois, rtol=1e-4, atol=1e-4)
    np.testing.assert_allclose(np.asarray(xc), ref_xc, rtol=1e-4, atol=1e-4)
    np.testing.assert_allclose(np.asarray(yc), ref_yc, rtol=1e-4, atol=1e-4)

    # also sanity-check the transpose-free channel-major path
    rois_cm, (xc2, yc2) = get_box_rois(regressed_result, (N, C, H, W),
                                       center_point, anchors_size, alpha,
                                       block_size=block_size,
                                       rois_layout="channel_major")
    jax.block_until_ready((rois_cm, xc2, yc2))
    np.testing.assert_allclose(
        np.transpose(np.asarray(rois_cm), (1, 2, 3, 4, 0)),
        ref_rois[..., 1:], rtol=1e-4, atol=1e-4)

    print("KERNEL_OK")
</pallas_src>

<mosaic_0001>
module attributes {stable_mosaic.version = 11 : i64} {
  func.func @kernel(%arg0: i32, %arg1: memref<2x8x128xf32, #tpu.memory_space<vmem>>, %arg2: memref<2x128xf32, #tpu.memory_space<vmem>>, %arg3: memref<8x1xf32, #tpu.memory_space<vmem>>, %arg4: memref<8x1xf32, #tpu.memory_space<vmem>>, %arg5: memref<4x8x128xf32, #tpu.memory_space<vmem>>, %arg6: memref<8x128xf32, #tpu.memory_space<vmem>>, %arg7: memref<8x128xf32, #tpu.memory_space<vmem>>) attributes {dimension_semantics = [#tpu.dimension_semantics<parallel>], iteration_bounds = array<i64: 2>, scalar_prefetch = 0 : i64, scratch_operands = 0 : i64, tpu.core_type = #tpu.core_type<tc>, window_params = [{transform_indices = @transform_0, window_bounds = array<i64: 2, 8, 128>}, {transform_indices = @transform_1, window_bounds = array<i64: 2, 128>}, {pipeline_mode = #tpu.pipeline_mode<synchronous>, transform_indices = @transform_2, window_bounds = array<i64: 8, 1>}, {pipeline_mode = #tpu.pipeline_mode<synchronous>, transform_indices = @transform_3, window_bounds = array<i64: 8, 1>}, {transform_indices = @transform_4, window_bounds = array<i64: 4, 8, 128>}, {transform_indices = @transform_5, window_bounds = array<i64: 8, 128>}, {transform_indices = @transform_6, window_bounds = array<i64: 8, 128>}]} {
    %c0 = arith.constant 0 : index
    %c0_0 = arith.constant 0 : index
    %c0_1 = arith.constant 0 : index
    %0 = vector.load %arg1[%c0, %c0_0, %c0_1] : memref<2x8x128xf32, #tpu.memory_space<vmem>>, vector<1x8x128xf32>
    %1 = vector.shape_cast %0 : vector<1x8x128xf32> to vector<8x128xf32>
    %c1 = arith.constant 1 : index
    %c0_2 = arith.constant 0 : index
    %c0_3 = arith.constant 0 : index
    %2 = vector.load %arg1[%c1, %c0_2, %c0_3] : memref<2x8x128xf32, #tpu.memory_space<vmem>>, vector<1x8x128xf32>
    %3 = vector.shape_cast %2 : vector<1x8x128xf32> to vector<8x128xf32>
    %c0_4 = arith.constant 0 : index
    %c0_5 = arith.constant 0 : index
    %4 = vector.load %arg2[%c0_4, %c0_5] : memref<2x128xf32, #tpu.memory_space<vmem>>, vector<1x128xf32>
    %c1_6 = arith.constant 1 : index
    %c0_7 = arith.constant 0 : index
    %5 = vector.load %arg2[%c1_6, %c0_7] : memref<2x128xf32, #tpu.memory_space<vmem>>, vector<1x128xf32>
    %c0_8 = arith.constant 0 : index
    %c0_9 = arith.constant 0 : index
    %6 = vector.load %arg3[%c0_8, %c0_9] : memref<8x1xf32, #tpu.memory_space<vmem>>, vector<8x1xf32>
    %7 = vector.shape_cast %6 : vector<8x1xf32> to vector<8x1xf32>
    %8 = vector.broadcast %7 : vector<8x1xf32> to vector<8x128xf32>
    %c0_10 = arith.constant 0 : index
    %c0_11 = arith.constant 0 : index
    %9 = vector.load %arg4[%c0_10, %c0_11] : memref<8x1xf32, #tpu.memory_space<vmem>>, vector<8x1xf32>
    %10 = vector.shape_cast %9 : vector<8x1xf32> to vector<8x1xf32>
    %11 = vector.broadcast %10 : vector<8x1xf32> to vector<8x128xf32>
    %cst = arith.constant 1.600000e+01 : f32
    %12 = vector.broadcast %cst : f32 to vector<8x128xf32>
    %13 = arith.subf %12, %8 : vector<8x128xf32>
    %cst_12 = arith.constant 1.600000e+01 : f32
    %14 = vector.broadcast %cst_12 : f32 to vector<8x128xf32>
    %15 = arith.subf %14, %11 : vector<8x128xf32>
    %cst_13 = arith.constant 3.14159274 : f32
    %16 = vector.broadcast %cst_13 : f32 to vector<8x128xf32>
    %17 = arith.mulf %1, %16 : vector<8x128xf32>
    %18 = math.sin %17 : vector<8x128xf32>
    %cst_14 = arith.constant 2.000000e+00 : f32
    %19 = vector.broadcast %cst_14 : f32 to vector<8x128xf32>
    %20 = arith.mulf %19, %18 : vector<8x128xf32>
    %21 = vector.broadcast %4 : vector<1x128xf32> to vector<8x128xf32>
    %22 = arith.addf %21, %20 : vector<8x128xf32>
    %23 = arith.maximumf %8, %22 : vector<8x128xf32>
    %24 = arith.minimumf %13, %23 : vector<8x128xf32>
    %cst_15 = arith.constant 3.14159274 : f32
    %25 = vector.broadcast %cst_15 : f32 to vector<8x128xf32>
    %26 = arith.mulf %3, %25 : vector<8x128xf32>
    %27 = math.sin %26 : vector<8x128xf32>
    %cst_16 = arith.constant 2.000000e+00 : f32
    %28 = vector.broadcast %cst_16 : f32 to vector<8x128xf32>
    %29 = arith.mulf %28, %27 : vector<8x128xf32>
    %30 = vector.broadcast %5 : vector<1x128xf32> to vector<8x128xf32>
    %31 = arith.addf %30, %29 : vector<8x128xf32>
    %32 = arith.maximumf %11, %31 : vector<8x128xf32>
    %33 = arith.minimumf %15, %32 : vector<8x128xf32>
    %c0_17 = arith.constant 0 : index
    %c0_18 = arith.constant 0 : index
    %34 = vector.load %arg6[%c0_17, %c0_18] : memref<8x128xf32, #tpu.memory_space<vmem>>, vector<8x128xf32>
    tpu.vector_store %arg6[%c0_17, %c0_18], %24 {strides = array<i32>} : memref<8x128xf32, #tpu.memory_space<vmem>>, vector<8x128xf32>,
    %c0_19 = arith.constant 0 : index
    %c0_20 = arith.constant 0 : index
    %35 = vector.load %arg7[%c0_19, %c0_20] : memref<8x128xf32, #tpu.memory_space<vmem>>, vector<8x128xf32>
    tpu.vector_store %arg7[%c0_19, %c0_20], %33 {strides = array<i32>} : memref<8x128xf32, #tpu.memory_space<vmem>>, vector<8x128xf32>,
    %36 = arith.subf %24, %8 : vector<8x128xf32>
    %c0_21 = arith.constant 0 : index
    %c0_22 = arith.constant 0 : index
    %c0_23 = arith.constant 0 : index
    %37 = vector.load %arg5[%c0_21, %c0_22, %c0_23] : memref<4x8x128xf32, #tpu.memory_space<vmem>>, vector<1x8x128xf32>
    %38 = vector.shape_cast %37 : vector<1x8x128xf32> to vector<8x128xf32>
    %39 = vector.shape_cast %36 : vector<8x128xf32> to vector<1x8x128xf32>
    tpu.vector_store %arg5[%c0_21, %c0_22, %c0_23], %39 {strides = array<i32>} : memref<4x8x128xf32, #tpu.memory_space<vmem>>, vector<1x8x128xf32>,
    %40 = arith.subf %33, %11 : vector<8x128xf32>
    %c1_24 = arith.constant 1 : index
    %c0_25 = arith.constant 0 : index
    %c0_26 = arith.constant 0 : index
    %41 = vector.load %arg5[%c1_24, %c0_25, %c0_26] : memref<4x8x128xf32, #tpu.memory_space<vmem>>, vector<1x8x128xf32>
    %42 = vector.shape_cast %41 : vector<1x8x128xf32> to vector<8x128xf32>
    %43 = vector.shape_cast %40 : vector<8x128xf32> to vector<1x8x128xf32>
    tpu.vector_store %arg5[%c1_24, %c0_25, %c0_26], %43 {strides = array<i32>} : memref<4x8x128xf32, #tpu.memory_space<vmem>>, vector<1x8x128xf32>,
    %44 = arith.addf %24, %8 : vector<8x128xf32>
    %c2 = arith.constant 2 : index
    %c0_27 = arith.constant 0 : index
    %c0_28 = arith.constant 0 : index
    %45 = vector.load %arg5[%c2, %c0_27, %c0_28] : memref<4x8x128xf32, #tpu.memory_space<vmem>>, vector<1x8x128xf32>
    %46 = vector.shape_cast %45 : vector<1x8x128xf32> to vector<8x128xf32>
    %47 = vector.shape_cast %44 : vector<8x128xf32> to vector<1x8x128xf32>
    tpu.vector_store %arg5[%c2, %c0_27, %c0_28], %47 {strides = array<i32>} : memref<4x8x128xf32, #tpu.memory_space<vmem>>, vector<1x8x128xf32>,
    %48 = arith.addf %33, %11 : vector<8x128xf32>
    %c3 = arith.constant 3 : index
    %c0_29 = arith.constant 0 : index
    %c0_30 = arith.constant 0 : index
    %49 = vector.load %arg5[%c3, %c0_29, %c0_30] : memref<4x8x128xf32, #tpu.memory_space<vmem>>, vector<1x8x128xf32>
    %50 = vector.shape_cast %49 : vector<1x8x128xf32> to vector<8x128xf32>
    %51 = vector.shape_cast %48 : vector<8x128xf32> to vector<1x8x128xf32>
    tpu.vector_store %arg5[%c3, %c0_29, %c0_30], %51 {strides = array<i32>} : memref<4x8x128xf32, #tpu.memory_space<vmem>>, vector<1x8x128xf32>,
    return
  }
  func.func @transform_0(%arg0: i32) -> (i32, i32, i32) {
    %c0_i32 = arith.constant 0 : i32
    %c0_i32_0 = arith.constant 0 : i32
    %c0_i32_1 = arith.constant 0 : i32
    return %c0_i32, %c0_i32_0, %arg0 : i32, i32, i32
  }
  func.func @transform_1(%arg0: i32) -> (i32, i32) {
    %c0_i32 = arith.constant 0 : i32
    %c0_i32_0 = arith.constant 0 : i32
    return %c0_i32, %arg0 : i32, i32
  }
  func.func @transform_2(%arg0: i32) -> (i32, i32) {
    %c0_i32 = arith.constant 0 : i32
    %c0_i32_0 = arith.constant 0 : i32
    %c0_i32_1 = arith.constant 0 : i32
    return %c0_i32, %c0_i32_0 : i32, i32
  }
  func.func @transform_3(%arg0: i32) -> (i32, i32) {
    %c0_i32 = arith.constant 0 : i32
    %c0_i32_0 = arith.constant 0 : i32
    %c0_i32_1 = arith.constant 0 : i32
    return %c0_i32, %c0_i32_0 : i32, i32
  }
  func.func @transform_4(%arg0: i32) -> (i32, i32, i32) {
    %c0_i32 = arith.constant 0 : i32
    %c0_i32_0 = arith.constant 0 : i32
    %c0_i32_1 = arith.constant 0 : i32
    return %c0_i32, %c0_i32_0, %arg0 : i32, i32, i32
  }
  func.func @transform_5(%arg0: i32) -> (i32, i32) {
    %c0_i32 = arith.constant 0 : i32
    %c0_i32_0 = arith.constant 0 : i32
    return %c0_i32, %arg0 : i32, i32
  }
  func.func @transform_6(%arg0: i32) -> (i32, i32) {
    %c0_i32 = arith.constant 0 : i32
    %c0_i32_0 = arith.constant 0 : i32
    return %c0_i32, %arg0 : i32, i32
  }
}

</mosaic_0001>

<bundles_post_ra>
// kernel: tpu_custom_call.1
= control target key start
LH: loop header
LB: loop body
LE: loop exit
PB: predicated region body
PF: predicated region fallthrough
CT: control target
= control target key end

     0   :  { %s1538_s0 = inlined_call_operand.hbm [shape: f32[2,8,256], index: 0, kind: input, shape index: {}]   ;;  %s1539_s1 = inlined_call_operand.vmem [shape: f32[2,256], index: 1, kind: input, shape index: {}]   ;;  %s1540_s2 = inlined_call_operand.vmem [shape: f32[8,1], index: 2, kind: input, shape index: {}]   ;;  %s1541_s3 = inlined_call_operand.vmem [shape: f32[8,1], index: 3, kind: input, shape index: {}]   ;;  %s1542_s4 = inlined_call_operand.hbm [shape: f32[4,8,256], index: 4, kind: output, shape index: {0}]   ;;  %s1543_s5 = inlined_call_operand.hbm [shape: f32[8,256], index: 5, kind: output, shape index: {1}]   ;;  %s1544_s6 = inlined_call_operand.hbm [shape: f32[8,256], index: 6, kind: output, shape index: {2}]  }
   0x1   :  { %1547 = sst [smem:[#allocation12_spill]] %s1538_s0 }
   0x2   :  { %1548 = sst [smem:[#allocation13_spill]] %s1539_s1 }
   0x3   :  { %12 = vsyncpa [#allocation3], 0 }
   0x4   :  { %14 = vsyncpa [#allocation3 + $0x1], 0 }
   0x5   :  { %15 = vsyncpa [#allocation4], 0 }
   0x6   :  { %17 = vsyncpa [#allocation4 + $0x1], 0 }
   0x7   :  { %18 = vsyncpa [#allocation7], 0 }
   0x8   :  { %20 = vsyncpa [#allocation7 + $0x1], 0  ;;  %s1168_s21 = smov 0   ;;  %s1170_s22 = smov 0  }
   0x9   :  { %s1172_s23 = smov 0   ;;  %s1174_s24 = smov 0  }
   0xa LB: > { %s1189_s25 = sadd.s32 4294967295, %s1118_s24   ;;  %s1545_s26 = sadd.s32 4294967294, %s1118_s24   ;;  %s1118_s24 = sphi %s1174_s24, %s1566_s24   ;;  %s1114_s23 = sphi %s1172_s23, %s1565_s23   ;;  %s1110_s22 = sphi %s1170_s22, %s1564_s22   ;;  %s1106_s21 = sphi %s1168_s21, %s1563_s21  }
   0xb   : > { %s1193_s27 = sadd.s32 1, %s1118_s24   ;;  %s33_s28 = sadd.s32 1, %s1114_s23 }
   0xc   : > { %s30_s29 = ssub.s32 %s1118_s24, %s1193_s27  ;;  %p40_p0 = scmp.ne.s32.totalorder %s1114_s23, %s1110_s22 }
   0xd   : > { %p31_p1 = scmp.eq.s32.totalorder %s30_s29, 0  ;;  %p41_p2 = scmp.eq.s32.totalorder %s1118_s24, 0 }
   0xe   : > { %p46_p3 = scmp.ne.s32.totalorder %s1110_s22, %s1106_s21  ;;  %p47_p4 = scmp.eq.s32.totalorder %s1189_s25, 0 }
   0xf   : > { %s1205_s30 = scalar_select %p31_p1, %s1114_s23, %s33_s28  }
  0x10   : > { %p1207_p5 = por %p41_p2, %p40_p0  ;;  %p1211_p6 = por %p47_p4, %p46_p3 }
  0x11   : > { %p138_p7 = scmp.eq.s32.totalorder %s1189_s25, 1  ;;  %p144_p8 = scmp.eq.s32.totalorder %s1545_s26, 1 }
  0x12   : > { %p863_p9 = scmp.ge.s32.totalorder %s1118_s24, 2  ;;  %p912_p10 = scmp.lt.s32.totalorder %s1118_s24, 2 }
  0x13   : > { %p1220_p11 = por %p138_p7, %p40_p0  ;;  %p1224_p12 = por %p144_p8, %p46_p3 }
  0x14   : > { %s222_s11 = sand.u32 1, %s1114_s23   ;;  %s865_s12 = sshll.u32 %s1118_s24, 3 }
  0x15   : > { %s864_s13 = sshll.u32 %s222_s11, 4  ;;  %s1553_s0 = sld [smem:[#allocation12_spill]] }
  0x16   : > { %s226_s18 = scalar_lea.vmem [#allocation2], %s864_s13  ;;  %p1235_p13 = pnand %p912_p10, %p1207_p5 }
  0x17   : > { %s233_s19 = sshll.u32 %s226_s18, 4  ;;  %p866_p0 = scmp.ge.s32.totalorder %s1118_s24, 1  ;;  %s234_s19 = int_to_ptr.vmem [resolvable:$true] %s233_s19 }
  0x18   : > { %s223_s28 = scalar_lea.sflag [#allocation3], %s222_s11  ;;  %p966_p2 = pneg %p1235_p13 }
  0x1b   : > { %s230_s16 = scalar_lea.hbm %s1553_s0, %s865_s12  ;;  %s969_s14 = scalar_lea.hbm %s1553_s0, 32 }
  0x1c   : > { %s231_s17 = sshll.u32 %s230_s16, 4  ;;  %s232_s17 = int_to_ptr.hbm [resolvable:$true] %s231_s17 }
  0x1d   : > { %s962_s29 = sshra.s32 %s232_s17, 4  ;;  %s963_s29 = int_to_ptr.hbm [resolvable:$true] %s962_s29 }
  0x1e   : > { %s964_s26 = scalar_lea.hbm %s963_s29, 16  ;;  %p970_p5 = scmp.lt.s32.totalorder %s963_s29, %s1553_s0 }
  0x1f   : > { %p965_p1 = scmp.ne.s32.totalorder %s963_s29, %s964_s26  ;;  %p971_p7 = scmp.lt.s32.totalorder %s969_s14, %s964_s26 }
  0x21   : > { %p967_p3 = pnand %p966_p2, %p965_p1  ;;  %p972_p8 = por %p971_p7, %p970_p5 }
  0x23   : > { %p968_p4 = pneg %p967_p3 }
  0x25   : > { %p973_p10 = pnand %p972_p8, %p968_p4 }
  0x27   : > { %976 = shalt.err (!%p973_p10)
}
  0x28   : > { %s1120_s11 = smov 256   ;;  %s1121_s16 = smov 128  }
  0x29   : > { %s1122_s18 = smov 8   ;;  %p248_p1 = scmp.lt.s32.totalorder %s1118_s24, 3 }
  0x2a   : > { %901 = dma.hbm_to_vmem [thread:$0]  (!%p1235_p13), %s232_s17, 256, %s234_s19, %s223_s28, %s1120_s11, %s1121_s16, %s1122_s18  }
  0x2b   : > { %p249_p2 = pnand %p866_p0, %p248_p1 }
  0x2c   : > { %s1254_s12 = sand.u32 (!%p249_p2), 1, %s1110_s22  }
  0x2d   : > { %252 = sbr.rel (%p249_p2) target bundleno = 205 (0xcd), region = 36  ;;  %s867_s26 = sshll.u32 (!%p249_p2), %s1254_s12, 4 }
  0x2e   : > { %s255_s29 = scalar_lea.sflag (!%p249_p2), [#allocation3], %s1254_s12  ;;  %s258_s13 = scalar_lea.vmem (!%p249_p2), [#allocation2], %s867_s26 }
  0x32   : > { %1093 = dma.done.wait (%p1211_p6), %s255_s29, 256  }
  0x33   : > { %1095 = vsyncadd (%p1211_p6), %s255_s29, 4294967040  ;;  %p302_p13 = scmp.lt.s32.totalorder %s1189_s25, 1  ;;  %v1123_v0 = vmov 0   ;;  %v311_v1 = vld [vmem:[%s1540_s2] sm:$0xff]  ;;  %s1555_s1 = sld [smem:[#allocation13_spill]]  ;;  %v872_v4 = vld [vmem:[%s258_s13 + $0x8] sm:$0xff] }
  0x34   : > { %959 = vset.pattern.permute.xlu0 %v1123_v0  ;;  %v306_v2 = vld [vmem:[%s258_s13] sm:$0xff]  ;;  %v1275_v5 = vmul.f32 3.1415927, %v872_v4  ;;  %v1124_v29 = vmov 683565275   ;;  %s1438_s16 = sshll.u32 %s1189_s25, 3 }
  0x35   : > { %s303_s17 = scalar_select %p302_p13, %s1189_s25, 1  ;;  %314 = vperm.xlu0 %959, %v311_v1   ;;  %v1273_v3 = vmul.f32 3.1415927, %v306_v2  ;;  %v317_v11 = vld [vmem:[%s1541_s3] sm:$0xff]  ;;  %v1125_v31 = vmov 2475754826  }
  0x36   : > { %v490_v8 = vand.u32 2139095040, %v1275_v5  ;;  %v487_v12 = vand.u32 2147483647, %v1275_v5  ;;  %v1126_v33 = vmov 2131351028   ;;  %s1546_s18 = sshll.u32 %s1254_s12, 3  ;;  %s697_s13 = scalar_lea.hbm %s1543_s5, %s1438_s16 }
  0x37   : > { %s871_s19 = sshll.u32 %s303_s17, 1  ;;  %v326_v6 = vand.u32 2147483647, %v1273_v3  ;;  %v329_v7 = vand.u32 2139095040, %v1273_v3  ;;  %v1127_v35 = vmov 2102212464   ;;  %s681_s8 = scalar_lea.hbm %s1542_s4, %s1438_s16 }
  0x38   : > { %v491_v13 = vshrl.u32 %v490_v8, 23  ;;  %v494_v19 = vand.u32 8388607, %v487_v12  ;;  %v1128_v37 = vmov 920167782   ;;  %s665_s17 = sand.u32 1, %s1189_s25   ;;  %s711_s29 = scalar_lea.hbm %s1544_s6, %s1438_s16 }
  0x39   : > { %s1271_s15 = scalar_lea.vmem %s1555_s1, %s871_s19  ;;  %v330_v9 = vshrl.u32 %v329_v7, 23  ;;  %v333_v10 = vand.u32 8388607, %v326_v6  ;;  %v1129_v45 = vmov 1326507024   ;;  %s294_s19 = scalar_lea.vmem [#allocation6], %s1546_s18 }
  0x3a   : > { %v876_v16 = vadd.s32 4294967169, %v491_v13  ;;  %v495_v27 = vor.u32 8388608, %v494_v19  ;;  %s699_s20 = sshll.u32 %s294_s19, 4  ;;  %s1448_s28 = sshll.u32 %s697_s13, 4  ;;  %s700_s20 = int_to_ptr.vmem [resolvable:$true] %s699_s20  ;;  %s702_s28 = int_to_ptr.hbm [resolvable:$true] %s1448_s28 }
  0x3b   : > { %v873_v14 = vadd.s32 4294967169, %v330_v9  ;;  %v334_v15 = vor.u32 8388608, %v333_v10  ;;  %s1462_s13 = scalar_lea.sflag [#allocation7], %s665_s17  ;;  %s1006_s18 = sshra.s32 %s702_s28, 4  ;;  %s1007_s18 = int_to_ptr.hbm [resolvable:$true] %s1006_s18 }
  0x3c   : > { %v497_v20 = vadd.s32 1, %v876_v16  ;;  %v1319_v2 = vshll.u32 %v495_v27, 8  ;;  %s1012_s7 = scalar_lea.hbm %s1543_s5, 16  ;;  %p1013_p4 = scmp.lt.s32.totalorder %s1007_s18, %s1543_s5 }
  0x3d   : > { %320 = vperm.xlu0 %959, %v317_v11   ;;  %v336_v17 = vadd.s32 1, %v873_v14  ;;  %v1286_v18 = vshll.u32 %v334_v15, 8 }
  0x3e   : > { %vm498_vm1 = vcmp.gt.s32.totalorder %v497_v20, 0 }
  0x3f   : > { %vm337_vm0 = vcmp.gt.s32.totalorder %v336_v17, 0  ;;  %v499_v24 = vsel %vm498_vm1, %v497_v20, 0  ;;  %v375_v25 = vand.u32 65535, %v1286_v18  ;;  %v376_v26 = vshrl.u32 %v1286_v18, 16 }
  0x40   : > { %v338_v21 = vsel %vm337_vm0, %v336_v17, 0  ;;  %v1296_v39 = vand.u32 31, %v499_v24  ;;  %v1322_v9 = vshrl.u32 %v499_v24, 5 }
  0x41   : > { %v339_v22 = vshrl.u32 %v338_v21, 5  ;;  %v340_v23 = vand.u32 31, %v338_v21 }
  0x42   : > { %v1304_v52 = vsub.s32 32, %v1296_v39  ;;  %v504_v53 = vshll.u32 %v1124_v29, %v1296_v39  ;;  %v507_v14 = vshll.u32 %v1125_v31, %v1296_v39  ;;  %vm519_vm10 = vcmp.lt.s32.totalorder %v1322_v9, 1 }
  0x43   : > { %v341_v28 = vsub.s32 32, %v340_v23  ;;  %v343_v30 = vshll.u32 %v1124_v29, %v340_v23  ;;  %v346_v32 = vshll.u32 %v1125_v31, %v340_v23  ;;  %v349_v34 = vshll.u32 %v1126_v33, %v340_v23 }
  0x44   : > { %v352_v36 = vshll.u32 %v1127_v35, %v340_v23  ;;  %v355_v38 = vshll.u32 %v1128_v37, %v340_v23  ;;  %vm358_vm2 = vcmp.lt.s32.totalorder %v339_v22, 1  ;;  %vm360_vm3 = vcmp.lt.s32.totalorder %v339_v22, 3 }
  0x45   : > { %v344_v40 = vshrl.u32 %v1125_v31, %v341_v28  ;;  %v347_v41 = vshrl.u32 %v1126_v33, %v341_v28  ;;  %v350_v42 = vshrl.u32 %v1127_v35, %v341_v28  ;;  %v353_v43 = vshrl.u32 %v1128_v37, %v341_v28 }
  0x46   : > { %v342_v44 = vshrl.u32 %v1124_v29, %v341_v28  ;;  %v356_v46 = vshrl.u32 %v1129_v45, %v341_v28  ;;  %vm361_vm4 = vcmp.lt.s32.totalorder %v339_v22, 4  ;;  %vm359_vm5 = vcmp.lt.s32.totalorder %v339_v22, 2 }
  0x47   : > { %v345_v47 = vor.u32 %v344_v40, %v343_v30  ;;  %v348_v48 = vor.u32 %v347_v41, %v346_v32  ;;  %v351_v49 = vor.u32 %v350_v42, %v349_v34  ;;  %v354_v50 = vor.u32 %v353_v43, %v352_v36 }
  0x48   : > { %v357_v51 = vor.u32 %v356_v46, %v355_v38  ;;  %v505_v1 = vshrl.u32 %v1125_v31, %v1304_v52  ;;  %v508_v27 = vshrl.u32 %v1126_v33, %v1304_v52  ;;  %v510_v43 = vshll.u32 %v1126_v33, %v1296_v39 }
  0x49   : > { %v362_v54 = vsel %vm358_vm2, %v342_v44, %v345_v47  ;;  %v363_v55 = vsel %vm361_vm4, %v351_v49, 2102212464  ;;  %v366_v56 = vsel %vm358_vm2, %v345_v47, %v348_v48  ;;  %v367_v57 = vsel %vm361_vm4, %v354_v50, 920167782 }
  0x4a   : > { %v364_v58 = vsel %vm360_vm3, %v348_v48, %v363_v55  ;;  %v368_v59 = vsel %vm360_vm3, %v351_v49, %v367_v57  ;;  %v370_v60 = vsel %vm358_vm2, %v348_v48, %v351_v49  ;;  %v371_v61 = vsel %vm361_vm4, %v357_v51, 1326507024 }
  0x4b   : > { %v369_v62 = vsel %vm359_vm5, %v366_v56, %v368_v59  ;;  %v372_v63 = vsel %vm360_vm3, %v354_v50, %v371_v61  ;;  %v1325_v10 = vsel %vm359_vm5, %v362_v54, %v364_v58  ;;  %v1328_v19 = vor.u32 %v505_v1, %v504_v53 }
  0x4c   : > { %v373_v4 = vsel %vm359_vm5, %v370_v60, %v372_v63  ;;  %v399_v7 = vand.u32 65535, %v369_v62  ;;  %v400_v8 = vshrl.u32 %v369_v62, 16  ;;  %v1336_v46 = vor.u32 %v508_v27, %v507_v14 }
  0x4d   : > { %v377_v11 = vand.u32 65535, %v373_v4  ;;  %v378_v13 = vshrl.u32 %v373_v4, 16  ;;  %v511_v49 = vshrl.u32 %v1127_v35, %v1304_v52  ;;  %v513_v53 = vshll.u32 %v1127_v35, %v1296_v39 }
  0x4e   : > { %v401_v15 = vmul.u32 %v399_v7, %v375_v25  ;;  %v402_v16 = vmul.u32 %v400_v8, %v375_v25  ;;  %v403_v17 = vmul.u32 %v399_v7, %v376_v26  ;;  %v404_v28 = vmul.u32 %v400_v8, %v376_v26 }
  0x4f   : > { %v379_v20 = vmul.u32 %v377_v11, %v375_v25  ;;  %v380_v21 = vmul.u32 %v378_v13, %v375_v25  ;;  %v381_v23 = vmul.u32 %v377_v11, %v376_v26  ;;  %v382_v24 = vmul.u32 %v378_v13, %v376_v26 }
  0x50   : > { %v405_v22 = vshll.u32 %v402_v16, 16  ;;  %v407_v30 = vshll.u32 %v403_v17, 16  ;;  %v406_v36 = vshrl.u32 %v402_v16, 16  ;;  %v408_v38 = vshrl.u32 %v403_v17, 16 }
  0x51   : > { %v383_v32 = vshll.u32 %v380_v21, 16  ;;  %v385_v34 = vshll.u32 %v381_v23, 16  ;;  %v384_v31 = vshrl.u32 %v380_v21, 16  ;;  %v386_v40 = vshrl.u32 %v381_v23, 16 }
  0x52   : > { %vm409_vm6 = vc.u32 %v401_v15, %v405_v22  ;;  %v411_v41 = vadd.s32 %v405_v22, %v401_v15  ;;  %v514_v33 = vshrl.u32 %v1128_v37, %v1304_v52  ;;  %v512_v55 = vor.u32 %v511_v49, %v510_v43 }
  0x53   : > { %vm387_vm7 = vc.u32 %v379_v20, %v383_v32  ;;  %v389_v42 = vadd.s32 %v383_v32, %v379_v20  ;;  %v410_v25 = vsel %vm409_vm6, 1, %v1123_v0  ;;  %v516_v56 = vshll.u32 %v1128_v37, %v1296_v39 }
  0x54   : > { %v388_v44 = vsel %vm387_vm7, 1, %v1123_v0  ;;  %v412_v26 = vadd.s32 %v410_v25, %v404_v28  ;;  %vm413_vm8 = vc.u32 %v411_v41, %v407_v30  ;;  %v517_v57 = vshrl.u32 %v1129_v45, %v1304_v52 }
  0x55   : > { %v390_v47 = vadd.s32 %v388_v44, %v382_v24  ;;  %vm391_vm9 = vc.u32 %v389_v42, %v385_v34  ;;  %v414_v48 = vsel %vm413_vm8, 1, %v1123_v0  ;;  %v1350_v58 = vadd.s32 %v411_v41, %v407_v30 }
  0x56   : > { %v392_v50 = vsel %vm391_vm9, 1, %v1123_v0  ;;  %v416_v51 = vadd.s32 %v414_v48, %v412_v26  ;;  %v515_v60 = vor.u32 %v514_v33, %v513_v53  ;;  %v518_v62 = vor.u32 %v517_v57, %v516_v56 }
  0x57   : > { %v394_v54 = vadd.s32 %v392_v50, %v390_v47  ;;  %vm521_vm11 = vcmp.lt.s32.totalorder %v1322_v9, 3  ;;  %vm522_vm12 = vcmp.lt.s32.totalorder %v1322_v9, 4  ;;  %vm520_vm13 = vcmp.lt.s32.totalorder %v1322_v9, 2 }
  0x58   : > { %v417_v59 = vadd.s32 %v416_v51, %v406_v36  ;;  %v527_v37 = vsel %vm519_vm10, %v1328_v19, %v1336_v46  ;;  %v419_v45 = vmul.u32 %v1286_v18, %v1325_v10  ;;  %v528_v63 = vsel %vm522_vm12, %v515_v60, 920167782 }
  0x59   : > { %v395_v61 = vadd.s32 %v394_v54, %v384_v31  ;;  %v531_v1 = vsel %vm519_vm10, %v1336_v46, %v512_v55  ;;  %v529_v7 = vsel %vm521_vm11, %v512_v55, %v528_v63  ;;  %v532_v8 = vsel %vm522_vm12, %v518_v62, 1326507024 }
  0x5a   : > { %v418_v35 = vadd.s32 %v417_v59, %v408_v38  ;;  %v536_v11 = vand.u32 65535, %v1319_v2  ;;  %v530_v18 = vsel %vm520_vm13, %v527_v37, %v529_v7  ;;  %v533_v10 = vsel %vm521_vm11, %v515_v60, %v532_v8 }
  0x5b   : > { %v1360_v39 = vadd.s32 %v395_v61, %v386_v40  ;;  %v537_v13 = vshrl.u32 %v1319_v2, 16  ;;  %v534_v15 = vsel %vm520_vm13, %v531_v1, %v533_v10  ;;  %v560_v16 = vand.u32 65535, %v530_v18 }
  0x5c   : > { %v422_v4 = vadd.s32 1, %v418_v35  ;;  %v561_v17 = vshrl.u32 %v530_v18, 16  ;;  %v538_v21 = vand.u32 65535, %v534_v15  ;;  %v539_v23 = vshrl.u32 %v534_v15, 16 }
  0x5d   : > { %vm421_vm14 = vc.u32 %v1360_v39, %v1350_v58  ;;  %v503_v27 = vshrl.u32 %v1124_v29, %v1304_v52  ;;  %v562_v24 = vmul.u32 %v560_v16, %v536_v11  ;;  %v564_v22 = vmul.u32 %v560_v16, %v537_v13 }
  0x5e   : > { %v423_v14 = vsel %vm421_vm14, %v422_v4, %v418_v35  ;;  %v563_v28 = vmul.u32 %v561_v17, %v536_v11  ;;  %v540_v32 = vmul.u32 %v538_v21, %v536_v11  ;;  %v541_v34 = vmul.u32 %v539_v23, %v536_v11 }
  0x5f   : > { %v424_v20 = vadd.s32 %v423_v14, %v419_v45  ;;  %v542_v36 = vmul.u32 %v538_v21, %v537_v13  ;;  %v565_v38 = vmul.u32 %v561_v17, %v537_v13  ;;  %v524_v41 = vsel %vm522_vm12, %v512_v55, 2102212464 }
  0x60   : > { %v566_v31 = vshll.u32 %v563_v28, 16  ;;  %v543_v42 = vmul.u32 %v539_v23, %v537_v13  ;;  %v544_v25 = vshll.u32 %v541_v34, 16  ;;  %v523_v29 = vsel %vm519_vm10, %v503_v27, %v1328_v19 }
  0x61   : > { %v425_v30 = vadd.s32 536870912, %v424_v20  ;;  %v546_v52 = vshll.u32 %v542_v36, 16  ;;  %v568_v43 = vshll.u32 %v564_v22, 16  ;;  %v525_v48 = vsel %vm521_vm11, %v1336_v46, %v524_v41 }
  0x62   : > { %vm570_vm15 = vc.u32 %v562_v24, %v566_v31  ;;  %vm548_vm0 = vc.u32 %v540_v32, %v544_v25  ;;  %v550_v26 = vadd.s32 %v544_v25, %v540_v32  ;;  %v572_v50 = vadd.s32 %v566_v31, %v562_v24 }
  0x63   : > { %v1385_v40 = vshrl.u32 %v425_v30, 30  ;;  %v571_v47 = vsel %vm570_vm15, 1, %v1123_v0  ;;  %v549_v49 = vsel %vm548_vm0, 1, %v1123_v0  ;;  %v545_v33 = vshrl.u32 %v541_v34, 16 }
  0x64   : > { %v573_v51 = vadd.s32 %v571_v47, %v565_v38  ;;  %v551_v19 = vadd.s32 %v549_v49, %v543_v42  ;;  %vm552_vm1 = vc.u32 %v550_v26, %v546_v52  ;;  %v547_v54 = vshrl.u32 %v542_v36, 16 }
  0x65   : > { %v427_v44 = vshll.u32 %v1385_v40, 30  ;;  %v553_v55 = vsel %vm552_vm1, 1, %v1123_v0  ;;  %v567_v56 = vshrl.u32 %v563_v28, 16  ;;  %vm574_vm2 = vc.u32 %v572_v50, %v568_v43 }
  0x66   : > { %v555_v59 = vadd.s32 %v553_v55, %v551_v19  ;;  %v575_v60 = vsel %vm574_vm2, 1, %v1123_v0  ;;  %v569_v61 = vshrl.u32 %v564_v22, 16  ;;  %v576_v37 = vadd.s32 %v572_v50, %v568_v43 }
  0x67   : > { %v428_v53 = vsub.s32 %v424_v20, %v427_v44  ;;  %v577_v46 = vadd.s32 %v575_v60, %v573_v51  ;;  %v526_v63 = vsel %vm520_vm13, %v523_v29, %v525_v48  ;;  %v420_v18 = vadd.s32 %v1350_v58, %v1360_v39 }
  0x68   : > { %v556_v35 = vadd.s32 %v555_v59, %v545_v33  ;;  %v580_v11 = vmul.u32 %v1319_v2, %v526_v63  ;;  %vm328_vm6 = vcmp.lt.s32.totalorder %v1273_v3, 0  ;;  %vm1408_vm8 = vcmp.le.f32.partialorder %v326_v6, 0.7853982 }
  0x69   : > { %vm429_vm3 = vcmp.lt.s32.totalorder %v428_v53, 0  ;;  %v430_v57 = vsub.s32 0, %v428_v53  ;;  %v578_v1 = vadd.s32 %v577_v46, %v567_v56  ;;  %v450_v25 = vsub.s32 4, %v1385_v40 }
  0x6a   : > { %v557_v4 = vadd.s32 %v556_v35, %v547_v54  ;;  %vm489_vm10 = vcmp.lt.s32.totalorder %v1275_v5, 0  ;;  %vm1426_vm11 = vcmp.le.f32.partialorder %v487_v12, 0.7853982  ;;  %vm469_vm15 = vweird.f32 %v1273_v3 }
  0x6b   : > { %v431_v62 = vsel %vm429_vm3, %v430_v57, %v428_v53  ;;  %v579_v8 = vadd.s32 %v578_v1, %v569_v61  ;;  %v451_v26 = vsel %vm328_vm6, %v450_v25, %v1385_v40  ;;  %vm630_vm3 = vweird.f32 %v1275_v5 }
  0x6c   : > { %v432_v45 = vclz %v431_v62  ;;  %vm582_vm4 = vc.u32 %v557_v4, %v576_v37  ;;  %v581_v6 = vadd.s32 %v576_v37, %v557_v4  ;;  %v453_v54 = vsel %vm1408_vm8, 0, %v451_v26 }
  0x6d   : > { %v583_v0 = vadd.s32 1, %v579_v8  ;;  %v470_v40 = vadd.s32 3, %v453_v54 }
  0x6e   : > { %v874_v7 = vadd.s32 4294967294, %v432_v45 }
  0x6f   : > { %v584_v16 = vsel %vm582_vm4, %v583_v0, %v579_v8 }
  0x70   : > { %vm875_vm5 = vcmp.lt.s32.totalorder %v874_v7, 0  ;;  %v585_v17 = vadd.s32 %v584_v16, %v580_v11 }
  0x71   : > { %v435_v10 = vsel %vm875_vm5, 0, %v874_v7  ;;  %v471_v7 = vand.u32 3, %v470_v40 }
  0x72   : > { %v436_v13 = vsub.s32 32, %v435_v10  ;;  %v437_v14 = vshll.u32 %v428_v53, %v435_v10  ;;  %v440_v15 = vsub.s32 4294967266, %v435_v10  ;;  %v586_v21 = vadd.s32 536870912, %v585_v17 }
  0x73   : > { %vm473_vm12 = vcmp.eq.s32.totalorder %v471_v7, 0  ;;  %vm476_vm13 = vcmp.eq.s32.totalorder %v471_v7, 2  ;;  %vm472_vm14 = vcmp.lt.s32.totalorder %v471_v7, 2 }
  0x74   : > { %v438_v9 = vshrl.u32 %v420_v18, %v436_v13  ;;  %v441_v20 = vadd.s32 127, %v440_v15  ;;  %v587_v24 = vshrl.u32 %v586_v21, 30 }
  0x76   : > { %v439_v23 = vor.u32 %v438_v9, %v437_v14  ;;  %v442_v27 = vshll.u32 %v441_v20, 23  ;;  %v588_v22 = vshll.u32 %v587_v24, 30  ;;  %v611_v11 = vsub.s32 4, %v587_v24 }
  0x78   : > { %v443_v28 = vor.u32 4788187, %v442_v27  ;;  %v446_v2 = vcvt.s32.f32 %v439_v23  ;;  %v589_v32 = vsub.s32 %v585_v17, %v588_v22  ;;  %v612_v15 = vsel %vm489_vm10, %v611_v11, %v587_v24 }
  0x79   : > { %v614_v12 = vsel %vm1426_vm11, 0, %v612_v15 }
  0x7a   : > { %v444_v30 = vand.u32 2147483647, %v443_v28  ;;  %vm590_vm7 = vcmp.lt.s32.totalorder %v589_v32, 0  ;;  %v591_v39 = vsub.s32 0, %v589_v32 }
  0x7c   : > { %v447_v58 = vmul.f32 %v446_v2, %v444_v30  ;;  %v592_v38 = vsel %vm590_vm7, %v591_v39, %v589_v32  ;;  %v631_v2 = vadd.s32 3, %v614_v12 }
  0x7d   : > { %v593_v41 = vclz %v592_v38 }
  0x7e   : > { %v448_v36 = vxor.u32 2147483648, %v447_v58  ;;  %v632_v38 = vand.u32 3, %v631_v2 }
  0x7f   : > { %v877_v52 = vadd.s32 4294967294, %v593_v41 }
  0x80   : > { %v449_v31 = vsel %vm328_vm6, %v448_v36, %v447_v58  ;;  %v960_v36 = vld [vmem:[%s1271_s15] ss:$0 sm:$0xff]  ;;  %vm637_vm0 = vcmp.eq.s32.totalorder %v632_v38, 2  ;;  %vm634_vm1 = vcmp.eq.s32.totalorder %v632_v38, 0  ;;  %vm633_vm2 = vcmp.lt.s32.totalorder %v632_v38, 2 }
  0x81   : > { %v452_v42 = vsel %vm1408_vm8, %v1273_v3, %v449_v31  ;;  %vm878_vm9 = vcmp.lt.s32.totalorder %v877_v52, 0 }
  0x82   : > { %v454_v29 = vmul.f32 %v452_v42, %v452_v42  ;;  %v596_v49 = vsel %vm878_vm9, 0, %v877_v52 }
  0x83   : > { %v597_v50 = vsub.s32 32, %v596_v49  ;;  %v598_v51 = vshll.u32 %v589_v32, %v596_v49  ;;  %v601_v53 = vsub.s32 4294967266, %v596_v49 }
  0x84   : > { %v455_v43 = vmul.f32 -0.001358992, %v454_v29  ;;  %v462_v44 = vmul.f32 -0.00019511016, %v454_v29 }
  0x85   : > { %v599_v55 = vshrl.u32 %v581_v6, %v597_v50  ;;  %v602_v56 = vadd.s32 127, %v601_v53 }
  0x86   : > { %v456_v47 = vadd.f32 0.041655596, %v455_v43  ;;  %v463_v48 = vadd.f32 0.008332121, %v462_v44 }
  0x87   : > { %v600_v60 = vor.u32 %v599_v55, %v598_v51  ;;  %v603_v61 = vshll.u32 %v602_v56, 23  ;;  %v961_v51 = vld [vmem:[%s1271_s15 + $0x1] ss:$0 sm:$0xff]  ;;  %s1008_s15 = scalar_lea.hbm %s1007_s18, 8 }
  0x88   : > { %v457_v33 = vmul.f32 %v456_v47, %v454_v29  ;;  %v464_v19 = vmul.f32 %v463_v48, %v454_v29  ;;  %p1009_p6 = scmp.ne.s32.totalorder %s1007_s18, %s1008_s15  ;;  %p1014_p5 = scmp.lt.s32.totalorder %s1012_s7, %s1008_s15 }
  0x89   : > { %v604_v35 = vor.u32 4788187, %v603_v61  ;;  %v607_v37 = vcvt.s32.f32 %v600_v60 }
  0x8a   : > { %v458_v57 = vadd.f32 -0.4999988, %v457_v33  ;;  %v465_v59 = vadd.f32 -0.16666654, %v464_v19  ;;  %p1010_p0 = pnand %p1009_p6, %p1220_p11  ;;  %p1015_p7 = por %p1014_p5, %p1013_p4 }
  0x8b   : > { %v605_v1 = vand.u32 2147483647, %v604_v35 }
  0x8c   : > { %v459_v46 = vmul.f32 %v458_v57, %v454_v29  ;;  %v466_v62 = vmul.f32 %v465_v59, %v454_v29  ;;  %p1011_p3 = pneg %p1010_p0 }
  0x8d   : > { %v608_v8 = vmul.f32 %v607_v37, %v605_v1 }
  0x8e   : > { %v467_v45 = vadd.f32 1.0, %v466_v62  ;;  %v460_v63 = vadd.f32 1.0, %v459_v46  ;;  %p1016_p8 = pnand %p1015_p7, %p1011_p3 }
  0x8f   : > { %v609_v13 = vxor.u32 2147483648, %v608_v8 }
  0x90   : > { %v468_v4 = vmul.f32 %v467_v45, %v452_v42  ;;  %v477_v0 = vxor.u32 2147483648, %v460_v63 }
  0x91   : > { %v610_v14 = vsel %vm489_vm10, %v609_v13, %v608_v8 }
  0x92   : > { %v474_v18 = vxor.u32 2147483648, %v468_v4  ;;  %v613_v16 = vsel %vm1426_vm11, %v1275_v5, %v610_v14  ;;  %v478_v9 = vsel %vm476_vm13, %v477_v0, %v468_v4 }
  0x93   : > { %v615_v20 = vmul.f32 %v613_v16, %v613_v16 }
  0x94   : > { %v475_v17 = vsel %vm473_vm12, %v460_v63, %v474_v18 }
  0x95   : > { %v616_v21 = vmul.f32 -0.001358992, %v615_v20  ;;  %v623_v23 = vmul.f32 -0.00019511016, %v615_v20  ;;  %v479_v27 = vsel %vm472_vm14, %v475_v17, %v478_v9 }
  0x96   : > { %v480_v22 = vsel %vm469_vm15, nan, %v479_v27 }
  0x97   : > { %v617_v28 = vadd.f32 0.041655596, %v616_v21  ;;  %v624_v24 = vadd.f32 0.008332121, %v623_v23  ;;  %v481_v34 = vmul.f32 2.0, %v480_v22 }
  0x99   : > { %v618_v30 = vmul.f32 %v617_v28, %v615_v20  ;;  %v625_v32 = vmul.f32 %v624_v24, %v615_v20  ;;  %v483_v25 = vadd.f32 %v960_v36, %v481_v34 }
  0x9b   : > { %v619_v58 = vadd.f32 -0.4999988, %v618_v30  ;;  %v626_v39 = vadd.f32 -0.16666654, %v625_v32 }
  0x9d   : > { %v620_v31 = vmul.f32 %v619_v58, %v615_v20  ;;  %v627_v41 = vmul.f32 %v626_v39, %v615_v20 }
  0x9f   : > { %v621_v3 = vadd.f32 1.0, %v620_v31  ;;  %v628_v42 = vadd.f32 1.0, %v627_v41 }
  0xa1   : > { %v629_v29 = vmul.f32 %v628_v42, %v613_v16  ;;  %v638_v52 = vxor.u32 2147483648, %v621_v3 }
  0xa3   : > { %v635_v44 = vxor.u32 2147483648, %v629_v29  ;;  %v639_v6 = vsel %vm637_vm0, %v638_v52, %v629_v29 }
  0xa5   : > { %v636_v48 = vsel %vm634_vm1, %v621_v3, %v635_v44 }
  0xa6   : > { %v640_v50 = vsel %vm633_vm2, %v636_v48, %v639_v6 }
  0xa7   : > { %v315_v43 = vpop.permute.xlu0 %314  ;;  %v641_v53 = vsel %vm630_vm3, nan, %v640_v50 }
  0xa8   : > { %v323_v26 = vsub.f32 16.0, %v315_v43  ;;  %v484_v47 = vmax.f32 %v315_v43, %v483_v25  ;;  %v642_v54 = vmul.f32 2.0, %v641_v53 }
  0xaa   : > { %v485_v49 = vmin.f32 %v323_v26, %v484_v47 }
  0xac   : > { %v649_v33 = vsub.f32 %v485_v49, %v315_v43  ;;  %v654_v19 = vadd.f32 %v485_v49, %v315_v43  ;;  %647 = vst [vmem:[%s294_s19] sm:$0xff] %v485_v49 }
  0xad   : > { %1019 = shalt.err (!%p1016_p8)
}
  0xae   : > { %893 = dma.vmem_to_hbm [thread:$0]  (%p1220_p11), %s700_s20, 128, %s702_s28, %s1462_s13   ;;  %v644_v5 = vadd.f32 %v961_v51, %v642_v54 }
  0xaf   : > { %s1560_s16 = sshll.u32 %s1254_s12, 5  ;;  %s1481_s0 = sshll.u32 %s681_s8, 4  ;;  %v321_v55 = vpop.permute.xlu0 %320  ;;  %s685_s0 = int_to_ptr.hbm [resolvable:$true] %s1481_s0 }
  0xb0   : > { %s1477_s17 = scalar_lea.vmem [#allocation5], %s1560_s16  ;;  %s1561_s1 = sshll.u32 %s1254_s12, 3  ;;  %v324_v56 = vsub.f32 16.0, %v321_v55  ;;  %v645_v57 = vmax.f32 %v321_v55, %v644_v5 }
  0xb1   : > { %s682_s19 = sshll.u32 %s1477_s17, 4  ;;  %650 = vst [vmem:[%s1477_s17] sm:$0xff] %v649_v33  ;;  %s301_s18 = scalar_lea.vmem [#allocation8], %s1561_s1  ;;  %s1486_s19 = int_to_ptr.vmem [resolvable:$true] %s682_s19 }
  0xb2   : > { %880 = vst [vmem:[%s1477_s17 + $0x10] sm:$0xff] %v654_v19  ;;  %s713_s14 = sshll.u32 %s301_s18, 4  ;;  %s715_s11 = sshll.u32 %s711_s29, 4  ;;  %v646_v59 = vmin.f32 %v324_v56, %v645_v57  ;;  %s714_s14 = int_to_ptr.vmem [resolvable:$true] %s713_s14  ;;  %s716_s11 = int_to_ptr.hbm [resolvable:$true] %s715_s11 }
  0xb3   : > { %s1034_s20 = sshra.s32 %s716_s11, 4  ;;  %s1040_s29 = scalar_lea.hbm %s1544_s6, 16  ;;  %s1035_s20 = int_to_ptr.hbm [resolvable:$true] %s1034_s20 }
  0xb4   : > { %v651_v60 = vsub.f32 %v646_v59, %v321_v55  ;;  %v657_v61 = vadd.f32 %v646_v59, %v321_v55  ;;  %648 = vst [vmem:[%s301_s18] sm:$0xff] %v646_v59  ;;  %s1036_s28 = scalar_lea.hbm %s1035_s20, 8  ;;  %p1041_p13 = scmp.lt.s32.totalorder %s1035_s20, %s1544_s6 }
  0xb5   : > { %p1037_p10 = scmp.ne.s32.totalorder %s1035_s20, %s1036_s28  ;;  %p1042_p6 = scmp.lt.s32.totalorder %s1040_s29, %s1036_s28 }
  0xb7   : > { %p1038_p1 = pnand %p1037_p10, %p1220_p11  ;;  %p1043_p0 = por %p1042_p6, %p1041_p13 }
  0xb9   : > { %p1039_p2 = pneg %p1038_p1 }
  0xbb   : > { %p1044_p3 = pnand %p1043_p0, %p1039_p2 }
  0xbd   : > { %1047 = shalt.err (!%p1044_p3)
}
  0xbe   : > { %894 = dma.vmem_to_hbm [thread:$0]  (%p1220_p11), %s714_s14, 128, %s716_s11, %s1462_s13   ;;  %879 = vst [vmem:[%s1477_s17 + $0x8] sm:$0xff] %v651_v60 }
  0xbf   : > { %881 = vst [vmem:[%s1477_s17 + $0x18] sm:$0xff] %v657_v61  ;;  %s661_s7 = scalar_lea.sflag [#allocation4], %s1254_s12  ;;  %s1062_s16 = sshra.s32 %s685_s0, 4  ;;  %s1063_s16 = int_to_ptr.hbm [resolvable:$true] %s1062_s16 }
  0xc0   : > { %s1064_s1 = scalar_lea.hbm %s1063_s16, 32  ;;  %s1068_s28 = scalar_lea.hbm %s1542_s4, 64 }
  0xc1   : > { %p1065_p4 = scmp.ne.s32.totalorder %s1063_s16, %s1064_s1  ;;  %p1069_p8 = scmp.lt.s32.totalorder %s1063_s16, %s1542_s4 }
  0xc2   : > { %p1070_p10 = scmp.lt.s32.totalorder %s1068_s28, %s1064_s1 }
  0xc3   : > { %p1066_p5 = pnand %p1065_p4, %p1220_p11 }
  0xc4   : > { %p1071_p1 = por %p1070_p10, %p1069_p8 }
  0xc5   : > { %p1067_p7 = pneg %p1066_p5 }
  0xc7   : > { %p1072_p2 = pnand %p1071_p1, %p1067_p7 }
  0xc9   : > { %1075 = shalt.err (!%p1072_p2)
}
  0xca   : > { %s1130_s12 = smov 128   ;;  %s1131_s13 = smov 256  }
  0xcb   : > { %s1132_s17 = smov 8  }
  0xcc   : > { %892 = dma.vmem_to_hbm [thread:$0]  (%p1220_p11), %s1486_s19, 512, %s685_s0, %s661_s7, %s1130_s12, %s1131_s13, %s1132_s17  }
  0xcd PF: > { %s727_s14 = sand.u32 1, %s1106_s21   ;;  %p903_p13 = pnand %p863_p9, %p1224_p12 }
  0xce   : > { %s728_s11 = scalar_lea.sflag [#allocation4], %s727_s14 }
  0xcf   : > { %p904_p6 = pneg %p903_p13 }
  0xd1   : > { %1097 = dma.done.wait (%p904_p6), %s728_s11, 512  }
  0xd2   : > { %1099 = vsyncadd (%p904_p6), %s728_s11, 4294966784  ;;  %s1562_s29 = sadd.s32 4294967294, %s1118_s24  }
  0xd3   : > { %s737_s15 = sand.u32 1, %s1562_s29  }
  0xd4   : > { %s738_s25 = scalar_lea.sflag [#allocation7], %s737_s15 }
  0xd5   : > { %1101 = dma.done.wait (%p904_p6), %s738_s25, 256  }
  0xd6   : > { %1103 = vsyncadd (%p904_p6), %s738_s25, 4294967040  ;;  %p23_p11 = scmp.ge.s32.totalorder %s1193_s27, 4   ;;  %s1563_s21 = smov %s1110_s22 }
  0xd7   : > { %s1564_s22 = smov %s1114_s23  ;;  %s1565_s23 = smov %s1205_s30 }
  0xd8   : > { %s1566_s24 = smov %s1193_s27  ;;  %25 = sbr.rel (!%p23_p11) target bundleno = 10 (0xa), region = 120 }
  0xdd   :  { %754 = vsyncpa [#allocation3], 1 }
  0xde   :  { %756 = vsyncpa [#allocation3 + $0x1], 1 }
  0xdf   :  { %757 = vsyncpa [#allocation4], 1 }
  0xe0   :  { %759 = vsyncpa [#allocation4 + $0x1], 1 }
  0xe1   :  { %760 = vsyncpa [#allocation7], 1 }
  0xe2   :  { %762 = vsyncpa [#allocation7 + $0x1], 1 }

</bundles_post_ra>
